<compile_context>
chip_gen: v7x
topology: tpu7x:2x2x1
jax: 0.10.0
libtpu: 0.0.40
codegen_flags: <defaults>
</compile_context>

<pallas_src>
import functools

import jax
import jax.numpy as jnp
from jax import lax
from jax.experimental import pallas as pl
from jax.experimental.pallas import tpu as pltpu

_LANE = 128


def _cdiv(a, b):
    return -(-a // b)


def _round_up(x, m):
    return ((x + m - 1) // m) * m


def _auto_num_partitions():
    """2 where the chip exposes 2 TensorCores to the grid scheduler (v7x, megacore
    v4/v5p), 1 on single-TensorCore chips (v5e/v6e).  Perf-only heuristic."""
    try:
        kind = jax.devices()[0].device_kind.lower()
    except Exception:
        return 2
    if any(tag in kind for tag in ("lite", "v5e", "v6")):
        return 1
    return 2


def _choose_tiling(rows, block_rows, num_partitions, sub):
    """Pick (block_rows br, n_outer, n_inner) such that:
       - br is a multiple of `sub` (sublane granularity) and <= rows,
       - every issued block *starts* inside the array (only the last block may be a
         partial boundary block),
       - n_outer partitions each run the same number of inner (reduction) steps."""
    br = max(sub, (min(block_rows, rows) // sub) * sub)
    total_blocks = _cdiv(rows, br)
    if num_partitions > 1 and total_blocks >= num_partitions:
        nb = _round_up(total_blocks, num_partitions)           # blocks to issue
        br2 = min(br, max(sub, _round_up(_cdiv(rows, nb), sub)))
        if (nb - 1) * br2 < rows:                              # all block starts in-bounds
            return br2, num_partitions, nb // num_partitions
    return br, 1, total_blocks


def _kd_kernel(s_ref, t_ref, out_ref, *, inv_t, n_inner, block_rows, chunk_rows,
               rows_valid, need_mask):
    i = pl.program_id(0)   # partition axis ("parallel": sharded across TensorCores)
    j = pl.program_id(1)   # reduction axis (last, "arbitrary")

    @pl.when(j == 0)
    def _():
        out_ref[...] = jnp.zeros_like(out_ref)

    blk_row0 = (i * n_inner + j) * block_rows      # first logical row of this block
    n_chunks = block_rows // chunk_rows

    def chunk_body(c, carry):
        r0 = pl.multiple_of(c * chunk_rows, chunk_rows)
        xs = s_ref[pl.ds(r0, chunk_rows), :].astype(jnp.float32) * inv_t
        xt = t_ref[pl.ds(r0, chunk_rows), :].astype(jnp.float32) * inv_t

        # Student: numerically stable logsigmoid(xs)  (2 EUP ops: exp, log1p).
        log_q = jnp.minimum(xs, 0.0) - jnp.log1p(jnp.exp(-jnp.abs(xs)))
        # Teacher: sigmoid via a single tanh, then guarded log  (2 EUP ops).
        p = 0.5 * (jnp.tanh(xt * 0.5) + 1.0)
        log_p = jnp.log(jnp.where(p > 0.0, p, 1.0))

        # PyTorch F.kl_div pointwise: target * (log(target) - input), 0 where target <= 0.
        elt = jnp.where(p > 0.0, p * (log_p - log_q), 0.0)

        if need_mask:
            # Rows past the true extent (partial boundary block) hold undefined data.
            row = blk_row0 + r0 + lax.broadcasted_iota(jnp.int32, elt.shape, 0)
            elt = jnp.where(row < rows_valid, elt, 0.0)

        # Reduce 8-row groups into the resident lane-dense (8,128) output block: VPU adds.
        out_ref[...] += elt.reshape(-1, 8, elt.shape[-1]).sum(axis=0)
        return carry

    lax.fori_loop(0, n_chunks, chunk_body, None)


def binary_kd_loss(s_out, t_out, kl_loss_factor=1.0, T=1.0,
                   block_rows=8192, num_partitions=None, chunk_rows=512):
    n = int(s_out.size)
    if n == 0:
        return jnp.zeros((), jnp.float32)
    n_part = _auto_num_partitions() if num_partitions is None else int(num_partitions)

    s = s_out.reshape(-1)
    t = t_out.reshape(-1)
    inv_t = 1.0 / float(T)
    scale = float(T) * float(T) * float(kl_loss_factor) / float(n)   # batchmean over N

    # 2-byte dtypes pack two rows per sublane; keep row counts a multiple of 16 there.
    sub = 16 if jnp.dtype(s.dtype).itemsize < 4 else 8
    rows = n // _LANE
    partial_sums = []

    if rows >= sub:
        n_main = rows * _LANE
        br, n_outer, n_inner = _choose_tiling(rows, int(block_rows), n_part, sub)
        need_mask = (n_outer * n_inner * br) > rows
        cr = chunk_rows if (chunk_rows >= 8 and br % chunk_rows == 0) else br

        # Lane-aligned N: pure metadata reshape (zero copy).  Otherwise a prefix slice
        # of the flat array (only when N % 128 != 0); the <128-element remainder is
        # handled in plain JAX below.
        s2 = (s if n_main == n else s[:n_main]).reshape(rows, _LANE)
        t2 = (t if n_main == n else t[:n_main]).reshape(rows, _LANE)

        kernel = functools.partial(
            _kd_kernel, inv_t=inv_t, n_inner=n_inner, block_rows=br,
            chunk_rows=cr, rows_valid=rows, need_mask=need_mask)

        partials = pl.pallas_call(
            kernel,
            out_shape=jax.ShapeDtypeStruct((n_outer * 8, _LANE), jnp.float32),
            grid_spec=pltpu.PrefetchScalarGridSpec(
                num_scalar_prefetch=0,
                grid=(n_outer, n_inner),                       # reduction axis last
                in_specs=[
                    pl.BlockSpec((br, _LANE), lambda i, j: (i * n_inner + j, 0)),
                    pl.BlockSpec((br, _LANE), lambda i, j: (i * n_inner + j, 0)),
                ],
                out_specs=pl.BlockSpec((8, _LANE), lambda i, j: (i, 0)),
            ),
            compiler_params=pltpu.CompilerParams(
                dimension_semantics=("parallel", "arbitrary"),
                vmem_limit_bytes=32 * 1024 * 1024,
            ),
        )(s2, t2)
        partial_sums.append(jnp.sum(partials))
        tail_start = n_main
    else:
        tail_start = 0   # too few full rows to be worth a kernel launch

    if tail_start < n:
        # Ragged remainder (< sub*128 elements): plain JAX, negligible.
        ts = s[tail_start:].astype(jnp.float32) * inv_t
        tt = t[tail_start:].astype(jnp.float32) * inv_t
        log_q = jax.nn.log_sigmoid(ts)
        p = jax.nn.sigmoid(tt)
        log_p = jnp.log(jnp.where(p > 0.0, p, 1.0))
        partial_sums.append(jnp.sum(jnp.where(p > 0.0, p * (log_p - log_q), 0.0)))

    total = partial_sums[0]
    for x in partial_sums[1:]:
        total = total + x
    return total * scale


def _reference_binary_kd_loss(s_out, t_out, kl_loss_factor=1.0, T=1.0):
    s = s_out.reshape(-1, 1).astype(jnp.float32)
    t = t_out.reshape(-1, 1).astype(jnp.float32)
    log_q = jax.nn.log_sigmoid(s / T)
    p = jax.nn.sigmoid(t / T)
    elt = jnp.where(p > 0.0, p * (jnp.log(jnp.where(p > 0.0, p, 1.0)) - log_q), 0.0)
    return (jnp.sum(elt) / s.shape[0]) * T * T * kl_loss_factor


if __name__ == "__main__":
    key = jax.random.PRNGKey(0)
    k1, k2, k3, k4, k5, k6 = jax.random.split(key, 6)
    kl_loss_factor, T = 1.0, 2.0

    # 1) Small NCHW case: single block, no mask, no tail.
    s_out = jax.random.normal(k1, (2, 4, 16, 16), dtype=jnp.float32)
    t_out = jax.random.normal(k2, (2, 4, 16, 16), dtype=jnp.float32)
    loss = jax.block_until_ready(binary_kd_loss(s_out, t_out, kl_loss_factor, T))
    ref = _reference_binary_kd_loss(s_out, t_out, kl_loss_factor, T)
    assert jnp.allclose(loss, ref, rtol=2e-5, atol=2e-6), (loss, ref)

    # 2) Larger case: one 1024-row block, chunked inner fori_loop (2 x 512-row chunks).
    s_big = jax.random.normal(k3, (1, 8, 128, 128), dtype=jnp.float32)
    t_big = jax.random.normal(k4, (1, 8, 128, 128), dtype=jnp.float32)
    loss_big = jax.block_until_ready(binary_kd_loss(s_big, t_big, kl_loss_factor, T))
    ref_big = _reference_binary_kd_loss(s_big, t_big, kl_loss_factor, T)
    assert jnp.allclose(loss_big, ref_big, rtol=2e-5, atol=2e-6), (loss_big, ref_big)

    # 3) Same inputs, forced multi-block 2-partition grid (2 x 2 blocks of 256 rows).
    loss_part = jax.block_until_ready(
        binary_kd_loss(s_big, t_big, kl_loss_factor, T, block_rows=256, num_partitions=2))
    assert jnp.allclose(loss_part, ref_big, rtol=2e-5, atol=2e-6), (loss_part, ref_big)

    # 4) Ragged size (N % 128 != 0): in-kernel row mask + <128-element plain-JAX tail.
    s_rag = jax.random.normal(k5, (3, 5, 17, 19), dtype=jnp.float32)
    t_rag = jax.random.normal(k6, (3, 5, 17, 19), dtype=jnp.float32)
    loss_rag = jax.block_until_ready(binary_kd_loss(s_rag, t_rag, kl_loss_factor, T))
    ref_rag = _reference_binary_kd_loss(s_rag, t_rag, kl_loss_factor, T)
    assert jnp.allclose(loss_rag, ref_rag, rtol=2e-5, atol=2e-6), (loss_rag, ref_rag)

    print("KERNEL_OK")
</pallas_src>

<mosaic_0001>
module attributes {stable_mosaic.version = 11 : i64} {
  func.func @_kd_kernel(%arg0: i32, %arg1: i32, %arg2: memref<16x128xf32, #tpu.memory_space<vmem>>, %arg3: memref<16x128xf32, #tpu.memory_space<vmem>>, %arg4: memref<8x128xf32, #tpu.memory_space<vmem>>) attributes {dimension_semantics = [#tpu.dimension_semantics<parallel>, #tpu.dimension_semantics<arbitrary>], iteration_bounds = array<i64: 1, 1>, scalar_prefetch = 0 : i64, scratch_operands = 0 : i64, tpu.core_type = #tpu.core_type<tc>, window_params = [{transform_indices = @transform_0, window_bounds = array<i64: 16, 128>}, {transform_indices = @transform_1, window_bounds = array<i64: 16, 128>}, {transform_indices = @transform_2, window_bounds = array<i64: 8, 128>}]} {
    %c0_i32 = arith.constant 0 : i32
    %0 = arith.cmpi eq, %arg1, %c0_i32 : i32
    %1 = arith.extui %0 : i1 to i32
    %c0_i32_0 = arith.constant 0 : i32
    %2 = arith.cmpi ne, %1, %c0_i32_0 : i32
    scf.if %2 {
      %cst_18 = arith.constant 0.000000e+00 : f32
      %44 = vector.broadcast %cst_18 : f32 to vector<8x128xf32>
      %c0_19 = arith.constant 0 : index
      %c0_20 = arith.constant 0 : index
      %45 = vector.load %arg4[%c0_19, %c0_20] : memref<8x128xf32, #tpu.memory_space<vmem>>, vector<8x128xf32>
      tpu.vector_store %arg4[%c0_19, %c0_20], %44 {strides = array<i32>} : memref<8x128xf32, #tpu.memory_space<vmem>>, vector<8x128xf32>,
    } else {
    }
    %c0_i32_1 = arith.constant 0 : i32
    %c16_i32 = arith.constant 16 : i32
    %3 = arith.muli %c0_i32_1, %c16_i32 : i32
    %4 = tpu.assume_multiple %3, 16 : i32
    %5 = arith.index_cast %4 : i32 to index
    %c0 = arith.constant 0 : index
    %6 = vector.load %arg2[%5, %c0] : memref<16x128xf32, #tpu.memory_space<vmem>>, vector<16x128xf32>
    %cst = arith.constant 5.000000e-01 : f32
    %7 = vector.broadcast %cst : f32 to vector<16x128xf32>
    %8 = arith.mulf %6, %7 : vector<16x128xf32>
    %9 = arith.index_cast %4 : i32 to index
    %c0_2 = arith.constant 0 : index
    %10 = vector.load %arg3[%9, %c0_2] : memref<16x128xf32, #tpu.memory_space<vmem>>, vector<16x128xf32>
    %cst_3 = arith.constant 5.000000e-01 : f32
    %11 = vector.broadcast %cst_3 : f32 to vector<16x128xf32>
    %12 = arith.mulf %10, %11 : vector<16x128xf32>
    %cst_4 = arith.constant 0.000000e+00 : f32
    %13 = vector.broadcast %cst_4 : f32 to vector<16x128xf32>
    %14 = arith.minimumf %8, %13 : vector<16x128xf32>
    %15 = math.absf %8 : vector<16x128xf32>
    %cst_5 = arith.constant 0.000000e+00 : f32
    %16 = vector.broadcast %cst_5 : f32 to vector<16x128xf32>
    %17 = arith.subf %16, %15 : vector<16x128xf32>
    %18 = math.exp %17 : vector<16x128xf32>
    %19 = math.log1p %18 : vector<16x128xf32>
    %20 = arith.subf %14, %19 : vector<16x128xf32>
    %cst_6 = arith.constant 5.000000e-01 : f32
    %21 = vector.broadcast %cst_6 : f32 to vector<16x128xf32>
    %22 = arith.mulf %12, %21 : vector<16x128xf32>
    %23 = math.tanh %22 : vector<16x128xf32>
    %cst_7 = arith.constant 1.000000e+00 : f32
    %24 = vector.broadcast %cst_7 : f32 to vector<16x128xf32>
    %25 = arith.addf %23, %24 : vector<16x128xf32>
    %cst_8 = arith.constant 5.000000e-01 : f32
    %26 = vector.broadcast %cst_8 : f32 to vector<16x128xf32>
    %27 = arith.mulf %26, %25 : vector<16x128xf32>
    %cst_9 = arith.constant 0.000000e+00 : f32
    %28 = vector.broadcast %cst_9 : f32 to vector<16x128xf32>
    %29 = arith.cmpf ogt, %27, %28 : vector<16x128xf32>
    %cst_10 = arith.constant 1.000000e+00 : f32
    %30 = vector.broadcast %cst_10 : f32 to vector<16x128xf32>
    %31 = arith.select %29, %27, %30 : vector<16x128xi1>, vector<16x128xf32>
    %32 = math.log %31 : vector<16x128xf32>
    %cst_11 = arith.constant 0.000000e+00 : f32
    %33 = vector.broadcast %cst_11 : f32 to vector<16x128xf32>
    %34 = arith.cmpf ogt, %27, %33 : vector<16x128xf32>
    %35 = arith.subf %32, %20 : vector<16x128xf32>
    %36 = arith.mulf %27, %35 : vector<16x128xf32>
    %cst_12 = arith.constant 0.000000e+00 : f32
    %37 = vector.broadcast %cst_12 : f32 to vector<16x128xf32>
    %38 = arith.select %34, %36, %37 : vector<16x128xi1>, vector<16x128xf32>
    %c0_13 = arith.constant 0 : index
    %c0_14 = arith.constant 0 : index
    %39 = vector.load %arg4[%c0_13, %c0_14] : memref<8x128xf32, #tpu.memory_space<vmem>>, vector<8x128xf32>
    %40 = vector.shape_cast %38 : vector<16x128xf32> to vector<2x8x128xf32>
    %cst_15 = arith.constant dense<0.000000e+00> : vector<8x128xf32>
    %41 = vector.multi_reduction <add>, %40, %cst_15 [0] : vector<2x8x128xf32> to vector<8x128xf32>
    %42 = arith.addf %39, %41 : vector<8x128xf32>
    %c0_16 = arith.constant 0 : index
    %c0_17 = arith.constant 0 : index
    %43 = vector.load %arg4[%c0_16, %c0_17] : memref<8x128xf32, #tpu.memory_space<vmem>>, vector<8x128xf32>
    tpu.vector_store %arg4[%c0_16, %c0_17], %42 {strides = array<i32>} : memref<8x128xf32, #tpu.memory_space<vmem>>, vector<8x128xf32>,
    %c1_i32 = arith.constant 1 : i32
    return
  }
  func.func @transform_0(%arg0: i32, %arg1: i32) -> (i32, i32) {
    %c1_i32 = arith.constant 1 : i32
    %0 = arith.muli %arg0, %c1_i32 : i32
    %1 = arith.addi %0, %arg1 : i32
    %c0_i32 = arith.constant 0 : i32
    %c0_i32_0 = arith.constant 0 : i32
    return %1, %c0_i32 : i32, i32
  }
  func.func @transform_1(%arg0: i32, %arg1: i32) -> (i32, i32) {
    %c1_i32 = arith.constant 1 : i32
    %0 = arith.muli %arg0, %c1_i32 : i32
    %1 = arith.addi %0, %arg1 : i32
    %c0_i32 = arith.constant 0 : i32
    %c0_i32_0 = arith.constant 0 : i32
    return %1, %c0_i32 : i32, i32
  }
  func.func @transform_2(%arg0: i32, %arg1: i32) -> (i32, i32) {
    %c0_i32 = arith.constant 0 : i32
    %c0_i32_0 = arith.constant 0 : i32
    return %arg0, %c0_i32 : i32, i32
  }
}

</mosaic_0001>

<bundles_post_ra>
// kernel: tpu_custom_call.1
= control target key start
LH: loop header
LB: loop body
LE: loop exit
PB: predicated region body
PF: predicated region fallthrough
CT: control target
= control target key end

     0   :  { %7 = vsyncpa [#allocation3], 0  ;;  %s291_s0 = inlined_call_operand.hbm [shape: f32[16,128], index: 0, kind: input, shape index: {}]   ;;  %s292_s1 = inlined_call_operand.hbm [shape: f32[16,128], index: 1, kind: input, shape index: {}]   ;;  %s293_s2 = inlined_call_operand.hbm [shape: f32[8,128], index: 2, kind: output, shape index: {}]  }
   0x1   :  { %8 = vsyncpa [#allocation6], 0 }
   0x2   :  { %9 = vsyncpa [#allocation4], 0  ;;  %s231_s9 = smov [#allocation2]   ;;  %s159_s13 = scalar_lea.hbm %s291_s0, 256 }
   0x3   :  { %s19_s10 = sshll.u32 %s231_s9, 4  ;;  %p160_p0 = scmp.ne.s32.totalorder %s291_s0, %s159_s13  ;;  %s20_s10 = int_to_ptr.vmem [resolvable:$true] %s19_s10 }
   0x4   :  { %p163_p1 = scmp.lt.u32.totalorder %s159_s13, %s291_s0 }
   0x6   :  { %p165_p2 = pnand %p163_p1, %p160_p0 }
   0x8   :  { %168 = shalt.err (!%p165_p2)
}
   0x9   :  { %s169_s18 = scalar_lea.vmem %s20_s10, 256  ;;  %p174_p4 = scmp.lt.s32.totalorder %s20_s10, %s20_s10 }
   0xa   :  { %p170_p3 = scmp.ne.s32.totalorder %s20_s10, %s169_s18  ;;  %p175_p5 = scmp.lt.s32.totalorder %s169_s18, %s169_s18 }
   0xc   :  { %p176_p6 = por %p175_p5, %p174_p4 }
   0xe   :  { %p177_p7 = pnand %p176_p6, %p170_p3 }
  0x10   :  { %180 = shalt.err (!%p177_p7)
}
  0x11   :  { %s232_s19 = smov 128   ;;  %s233_s20 = smov 8  }
  0x12   :  { %25 = dma.hbm_to_vmem [thread:$0]  %s291_s0, 256, %s20_s10, [#allocation3], %s232_s19, %s232_s19, %s233_s20  }
  0x13   :  { %s234_s23 = smov [#allocation5]   ;;  %s181_s27 = scalar_lea.hbm %s292_s1, 256 }
  0x14   :  { %s35_s24 = sshll.u32 %s234_s23, 4  ;;  %p182_p8 = scmp.ne.s32.totalorder %s292_s1, %s181_s27  ;;  %s36_s24 = int_to_ptr.vmem [resolvable:$true] %s35_s24 }
  0x15   :  { %p185_p9 = scmp.lt.u32.totalorder %s181_s27, %s292_s1 }
  0x17   :  { %p187_p10 = pnand %p185_p9, %p182_p8 }
  0x19   :  { %190 = shalt.err (!%p187_p10)
}
  0x1a   :  { %s191_s4 = scalar_lea.vmem %s36_s24, 256  ;;  %p196_p12 = scmp.lt.s32.totalorder %s36_s24, %s36_s24 }
  0x1b   :  { %p192_p11 = scmp.ne.s32.totalorder %s36_s24, %s191_s4  ;;  %p197_p13 = scmp.lt.s32.totalorder %s191_s4, %s191_s4 }
  0x1d   :  { %p198_p0 = por %p197_p13, %p196_p12 }
  0x1f   :  { %p199_p1 = pnand %p198_p0, %p192_p11 }
  0x21   :  { %202 = shalt.err (!%p199_p1)
}
  0x22   :  { %41 = dma.hbm_to_vmem [thread:$0]  %s292_s1, 256, %s36_s24, [#allocation6], %s232_s19, %s232_s19, %s233_s20  }
  0x23   :  { %225 = dma.done.wait [#allocation3], 256  }
  0x24   :  { %226 = vsyncadd [#allocation3], 4294967040 }
  0x25   :  { %227 = dma.done.wait [#allocation6], 256  }
  0x26   :  { %228 = vsyncadd [#allocation6], 4294967040  ;;  %v57_v0 = vld [vmem:[#allocation2] sm:$0xff]  ;;  %v58_v1 = vld [vmem:[#allocation2 + $0x8] sm:$0xff]  ;;  %s235_s1 = smov [#allocation7]  }
  0x27   :  { %v61_v2 = vld [vmem:[#allocation5] sm:$0xff]  ;;  %v59_v3 = vmul.f32 0.5, %v57_v0  ;;  %v60_v4 = vmul.f32 0.5, %v58_v1  ;;  %v62_v5 = vld [vmem:[#allocation5 + $0x8] sm:$0xff]  ;;  %s127_s6 = sshll.u32 %s235_s1, 4  ;;  %s128_s6 = int_to_ptr.vmem [resolvable:$true] %s127_s6 }
  0x28   :  { %v63_v6 = vmul.f32 0.5, %v61_v2  ;;  %v64_v7 = vmul.f32 0.5, %v62_v5  ;;  %s203_s7 = scalar_lea.vmem %s128_s6, 128  ;;  %p208_p3 = scmp.lt.s32.totalorder %s128_s6, %s128_s6 }
  0x29   :  { %v67_v8 = vand.u32 2147483647, %v59_v3  ;;  %v68_v9 = vand.u32 2147483647, %v60_v4  ;;  %v65_v36 = vmin.f32 %v59_v3, 0.0  ;;  %v66_v39 = vmin.f32 %v60_v4, 0.0  ;;  %p204_p2 = scmp.ne.s32.totalorder %s128_s6, %s203_s7  ;;  %p209_p4 = scmp.lt.s32.totalorder %s203_s7, %s203_s7 }
  0x2a   :  { %v95_v10 = vmul.f32 0.5, %v63_v6  ;;  %v96_v11 = vmul.f32 0.5, %v64_v7 }
  0x2b   :  { %v69_v12 = vsub.f32 0.0, %v67_v8  ;;  %v70_v13 = vsub.f32 0.0, %v68_v9  ;;  %p210_p5 = por %p209_p4, %p208_p3 }
  0x2c   :  { %143 = vtanh.f32 %v95_v10 }
  0x2d   :  { %v71_v14 = vmul.f32 1.442695, %v69_v12  ;;  %v73_v15 = vmul.f32 1.442695, %v70_v13  ;;  %145 = vtanh.f32 %v96_v11  ;;  %p211_p6 = pnand %p210_p5, %p204_p2 }
  0x2f   :  { %147 = vpow2.f32 %v71_v14 }
  0x30   :  { %149 = vpow2.f32 %v73_v15 }
  0x36   :  { %v144_v16 = vpop.eup %143 }
  0x37   :  { %v146_v17 = vpop.eup %145  ;;  %v99_v18 = vadd.f32 1.0, %v144_v16 }
  0x38   :  { %v100_v19 = vadd.f32 1.0, %v146_v17 }
  0x39   :  { %v148_v20 = vpop.eup %147  ;;  %v101_v21 = vmul.f32 0.5, %v99_v18 }
  0x3a   :  { %v150_v22 = vpop.eup %149  ;;  %v75_v23 = vadd.f32 1.0, %v148_v20  ;;  %v102_v24 = vmul.f32 0.5, %v100_v19  ;;  %v78_v26 = vmul.f32 -0.5, %v148_v20  ;;  %v81_v31 = vand.u32 2147483647, %v148_v20 }
  0x3b   :  { %v84_v25 = vadd.f32 1.0, %v150_v22  ;;  %vm103_vm0 = vcmp.gt.f32.partialorder %v101_v21, 0.0  ;;  %v87_v28 = vmul.f32 -0.5, %v150_v22  ;;  %v90_v33 = vand.u32 2147483647, %v150_v22 }
  0x3c   :  { %151 = vlog2.f32 %v75_v23  ;;  %vm104_vm1 = vcmp.gt.f32.partialorder %v102_v24, 0.0  ;;  %v105_v27 = vsel %vm103_vm0, %v101_v21, 1.0  ;;  %v79_v30 = vadd.f32 1.0, %v78_v26 }
  0x3d   :  { %153 = vlog2.f32 %v84_v25  ;;  %v106_v29 = vsel %vm104_vm1, %v102_v24, 1.0  ;;  %v88_v32 = vadd.f32 1.0, %v87_v28  ;;  %vm82_vm2 = vcmp.lt.f32.partialorder %v81_v31, 0.0004427343 }
  0x3e   :  { %155 = vlog2.f32 %v105_v27  ;;  %v80_v34 = vmul.f32 %v148_v20, %v79_v30  ;;  %vm91_vm3 = vcmp.lt.f32.partialorder %v90_v33, 0.0004427343 }
  0x3f   :  { %157 = vlog2.f32 %v106_v29  ;;  %v89_v37 = vmul.f32 %v150_v22, %v88_v32 }
  0x46   :  { %v152_v35 = vpop.eup %151 }
  0x47   :  { %v154_v38 = vpop.eup %153  ;;  %v77_v40 = vmul.f32 0.6931472, %v152_v35 }
  0x48   :  { %v156_v41 = vpop.eup %155  ;;  %v86_v42 = vmul.f32 0.6931472, %v154_v38 }
  0x49   :  { %v158_v43 = vpop.eup %157  ;;  %v83_v44 = vsel %vm82_vm2, %v80_v34, %v77_v40  ;;  %v108_v45 = vmul.f32 0.6931472, %v156_v41 }
  0x4a   :  { %v92_v46 = vsel %vm91_vm3, %v89_v37, %v86_v42  ;;  %v93_v47 = vsub.f32 %v65_v36, %v83_v44  ;;  %v110_v48 = vmul.f32 0.6931472, %v158_v43 }
  0x4b   :  { %v94_v49 = vsub.f32 %v66_v39, %v92_v46 }
  0x4c   :  { %v111_v50 = vsub.f32 %v108_v45, %v93_v47 }
  0x4d   :  { %v112_v51 = vsub.f32 %v110_v48, %v94_v49 }
  0x4e   :  { %v113_v52 = vmul.f32 %v111_v50, %v101_v21 }
  0x4f   :  { %v114_v53 = vmul.f32 %v112_v51, %v102_v24 }
  0x50   :  { %v115_v54 = vsel %vm103_vm0, %v113_v52, 0.0 }
  0x51   :  { %v116_v55 = vsel %vm104_vm1, %v114_v53, 0.0 }
  0x52   :  { %v118_v56 = vadd.f32 %v116_v55, %v115_v54 }
  0x54   :  { %120 = vst [vmem:[#allocation7] sm:$0xff] %v118_v56 }
  0x55   :  { %214 = shalt.err (!%p211_p6)
}
  0x56   :  { %s215_s10 = scalar_lea.hbm %s293_s2, 128 }
  0x57   :  { %p216_p7 = scmp.ne.s32.totalorder %s293_s2, %s215_s10  ;;  %p219_p8 = scmp.lt.u32.totalorder %s215_s10, %s293_s2 }
  0x59   :  { %p221_p9 = pnand %p219_p8, %p216_p7 }
  0x5b   :  { %224 = shalt.err (!%p221_p9)
}
  0x5c   :  { %130 = dma.vmem_to_hbm [thread:$0]  %s128_s6, 128, %s293_s2, [#allocation4]  }
  0x5d   :  { %229 = dma.done.wait [#allocation4], 128  }
  0x5e   :  { %230 = vsyncadd [#allocation4], 4294967168 }
  0x5f   :  { %134 = vsyncpa [#allocation3], 1 }
  0x60   :  { %135 = vsyncpa [#allocation6], 1 }
  0x61   :  { %136 = vsyncpa [#allocation4], 1 }

</bundles_post_ra>
